<compile_context>
chip_gen: v5e
topology: v5e:2x2
jax: 0.10.0
libtpu: 0.0.40
codegen_flags: <defaults>
</compile_context>

<pallas_src>
import jax
import jax.numpy as jnp
from jax.experimental import pallas as pl
from jax.experimental.pallas import tpu as pltpu


# ---------------------------------------------------------------------------
# Pallas kernels
# ---------------------------------------------------------------------------

def _make_conv_pool_kernel(with_bn):
    """Fused conv(as matmul) + bias + ReLU + MaxPool2d(2) (+ BN2 affine).

    Each of the 4 patch refs holds the im2col rows of one 2x2 pooling tap for
    the same set of *pooled* output pixels, so MaxPool is a plain elementwise
    max of the 4 matmul results (ReLU applied before the max, matching the
    module's Conv->[BN]->ReLU->...->MaxPool ordering).
    """

    def kernel(p00_ref, p01_ref, p10_ref, p11_ref, w_ref, b_ref, *rest):
        if with_bn:
            scale_ref, shift_ref, o_ref = rest
        else:
            (o_ref,) = rest

        w = w_ref[...]            # (K, Cout)  bf16
        b = b_ref[...]            # (1, Cout)  f32

        def tap(p_ref):
            acc = jnp.dot(p_ref[0], w, preferred_element_type=jnp.float32)
            return jnp.maximum(acc + b, 0.0)      # conv bias + ReLU (pre-pool)

        # Sequential max keeps at most two full-size f32 tiles live in VMEM.
        pooled = tap(p00_ref)
        pooled = jnp.maximum(pooled, tap(p01_ref))
        pooled = jnp.maximum(pooled, tap(p10_ref))
        pooled = jnp.maximum(pooled, tap(p11_ref))

        if with_bn:                                # eval-mode BN2 (post-pool)
            pooled = pooled * scale_ref[...] + shift_ref[...]

        o_ref[0] = pooled.astype(o_ref.dtype)

    return kernel


def _linear_kernel(x_ref, w_ref, b_ref, o_ref):
    """out = x @ W^T + b, weight kept lane-dense as (n_cls, in_feat)."""
    o_ref[...] = jax.lax.dot_general(
        x_ref[...], w_ref[...],
        dimension_numbers=(((1,), (1,)), ((), ())),
        preferred_element_type=jnp.float32) + b_ref[...]


# ---------------------------------------------------------------------------
# pallas_call wrappers
# ---------------------------------------------------------------------------

def _pick_pooled_row_tile(hout, wout, k, patch_bytes_budget=2 * 1024 * 1024):
    """Pooled-output rows per grid step: largest divisor of hout whose four
    bf16 patch blocks fit the budget and whose block second-minor dim
    (tp * wout) stays a multiple of 8 (or covers the full array)."""
    cands = [tp for tp in range(1, hout + 1)
             if hout % tp == 0 and ((tp * wout) % 8 == 0 or tp == hout)]
    fitting = [tp for tp in cands
               if 4 * tp * wout * k * 2 <= patch_bytes_budget]
    return max(fitting) if fitting else min(cands)


def _conv_pool_stage(taps, w_mat, bias, scale=None, shift=None, *,
                     hout, wout, out_dtype):
    """relu(conv(x)+b) -> MaxPool2d(2) [-> BN affine] as one fused pallas_call."""
    n = taps[0].shape[0]
    k, cout = w_mat.shape
    tp = _pick_pooled_row_tile(hout, wout, k)
    rows = tp * wout
    grid = (n, hout // tp)

    tile_map = lambda b, i: (b, i, 0)
    full_map = lambda b, i: (0, 0)

    in_specs = [pl.BlockSpec((1, rows, k), tile_map) for _ in range(4)]
    in_specs += [pl.BlockSpec((k, cout), full_map),
                 pl.BlockSpec((1, cout), full_map)]
    args = list(taps) + [w_mat, bias]

    with_bn = scale is not None
    if with_bn:
        in_specs += [pl.BlockSpec((1, cout), full_map),
                     pl.BlockSpec((1, cout), full_map)]
        args += [scale, shift]

    return pl.pallas_call(
        _make_conv_pool_kernel(with_bn),
        out_shape=jax.ShapeDtypeStruct((n, hout * wout, cout), out_dtype),
        grid=grid,
        in_specs=in_specs,
        out_specs=pl.BlockSpec((1, rows, cout), tile_map),
        compiler_params=pltpu.CompilerParams(
            # Both grid axes are independent -> megacore sharding on v7x.
            dimension_semantics=("parallel", "parallel"),
            # Tiles are sized to a few MB; 32 MiB fits every generation
            # (incl. v7x's 64 MiB physical VMEM) with headroom.
            vmem_limit_bytes=32 * 1024 * 1024),
    )(*args)


# ---------------------------------------------------------------------------
# JAX glue (patch extraction, layout plumbing)
# ---------------------------------------------------------------------------

def _im2col_pool_taps(x_nhwc, k=5, pad=2):
    """SAME-padded kxk im2col patches, split into the 4 MaxPool(2) taps.

    Returns 4 arrays of shape (N, (H//2)*(W//2), k*k*C) in bf16; tap (dh, dw)
    row ho*(W//2)+wo holds the patch of conv-output pixel (2ho+dh, 2wo+dw).
    K ordering is (kh, kw, cin), matching _conv_weight_to_mat.
    """
    x = x_nhwc.astype(jnp.bfloat16)
    n, h, w, c = x.shape
    xp = jnp.pad(x, ((0, 0), (pad, pad), (pad, pad), (0, 0)))
    cols = []
    for kh in range(k):
        for kw in range(k):
            cols.append(xp[:, kh:kh + h, kw:kw + w, :])
    patches = jnp.concatenate(cols, axis=-1)            # (N, H, W, k*k*C)
    taps = []
    for dh in (0, 1):
        for dw in (0, 1):
            t = patches[:, dh::2, dw::2, :]             # (N, H//2, W//2, K)
            taps.append(t.reshape(n, (h // 2) * (w // 2), k * k * c))
    return taps


def _conv_weight_to_mat(w_oihw):
    """PyTorch (Cout, Cin, kh, kw) -> (kh*kw*Cin, Cout), matching patch K order."""
    cout = w_oihw.shape[0]
    return jnp.transpose(w_oihw, (2, 3, 1, 0)).reshape(-1, cout)


# ---------------------------------------------------------------------------
# Forward pass
# ---------------------------------------------------------------------------

def cnn_forward(x_nchw, params):
    n, _, h, w = x_nchw.shape
    x = jnp.transpose(x_nchw, (0, 2, 3, 1)).astype(jnp.float32)   # NCHW -> NHWC

    # ---- conv1: Conv(3->16,5,1,2) -> BN -> ReLU -> Dropout(id) -> MaxPool(2)
    #      BN1 already folded into w1_mat/b1; fused matmul+bias+relu+pool kernel.
    c1 = params["w1_mat"].shape[1]
    h1, w1 = h // 2, w // 2
    taps1 = _im2col_pool_taps(x)
    a1 = _conv_pool_stage(taps1, params["w1_mat"], params["b1"],
                          hout=h1, wout=w1, out_dtype=jnp.bfloat16)
    a1 = a1.reshape(n, h1, w1, c1)

    # ---- conv2: Conv(16->32,5,1,2) -> ReLU -> MaxPool(2) -> BN -> Dropout(id)
    #      BN2 cannot be folded (pool sits between ReLU and BN); applied
    #      post-pool inside the same fused kernel.
    c2 = params["w2_mat"].shape[1]
    h2, w2 = h1 // 2, w1 // 2
    taps2 = _im2col_pool_taps(a1)
    a2 = _conv_pool_stage(taps2, params["w2_mat"], params["b2"],
                          params["bn2_scale"], params["bn2_shift"],
                          hout=h2, wout=w2, out_dtype=jnp.float32)

    # ---- flatten exactly like PyTorch x.view(N, -1) on the NCHW tensor
    feat = jnp.transpose(a2, (0, 2, 1)).reshape(n, c2 * h2 * w2)

    # ---- out: Linear(32*(H//4)*(W//4), 2); weight stays lane-dense (2, in_feat).
    n_cls = params["w_out"].shape[0]
    out = pl.pallas_call(
        _linear_kernel,
        out_shape=jax.ShapeDtypeStruct((n, n_cls), jnp.float32),
        in_specs=[pl.BlockSpec(memory_space=pltpu.MemorySpace.VMEM)] * 3,
        out_specs=pl.BlockSpec(memory_space=pltpu.MemorySpace.VMEM),
    )(feat, params["w_out"], params["b_out"])
    return out, feat


# ---------------------------------------------------------------------------
# Deterministic parameter init (shapes follow the PyTorch module __init__)
# ---------------------------------------------------------------------------

def init_params(key, h, w):
    cin, c1, c2, n_cls = 3, 16, 32, 2
    eps = 1e-5
    in_feat = c2 * (h // 4) * (w // 4)   # 32*56*56 in the original 224x224 setup
    ks = jax.random.split(key, 14)

    w1 = 0.05 * jax.random.normal(ks[0], (c1, cin, 5, 5), jnp.float32)
    b1 = 0.05 * jax.random.normal(ks[1], (c1,), jnp.float32)
    w2 = 0.05 * jax.random.normal(ks[2], (c2, c1, 5, 5), jnp.float32)
    b2 = 0.05 * jax.random.normal(ks[3], (c2,), jnp.float32)

    g1 = 1.0 + 0.1 * jax.random.normal(ks[4], (c1,), jnp.float32)
    be1 = 0.1 * jax.random.normal(ks[5], (c1,), jnp.float32)
    rm1 = 0.1 * jax.random.normal(ks[6], (c1,), jnp.float32)
    rv1 = jnp.abs(jax.random.normal(ks[7], (c1,), jnp.float32)) + 0.5

    g2 = 1.0 + 0.1 * jax.random.normal(ks[8], (c2,), jnp.float32)
    be2 = 0.1 * jax.random.normal(ks[9], (c2,), jnp.float32)
    rm2 = 0.1 * jax.random.normal(ks[10], (c2,), jnp.float32)
    rv2 = jnp.abs(jax.random.normal(ks[11], (c2,), jnp.float32)) + 0.5

    w_out = 0.02 * jax.random.normal(ks[12], (n_cls, in_feat), jnp.float32)
    b_out = 0.02 * jax.random.normal(ks[13], (n_cls,), jnp.float32)

    bn1_scale = g1 / jnp.sqrt(rv1 + eps)
    bn1_shift = be1 - rm1 * bn1_scale
    bn2_scale = g2 / jnp.sqrt(rv2 + eps)
    bn2_shift = be2 - rm2 * bn2_scale

    # Fold eval-mode BN1 into the conv1 weights/bias (exact: BN1 is a
    # per-output-channel affine applied before the ReLU).
    w1_mat = _conv_weight_to_mat(w1) * bn1_scale[None, :]
    b1_fold = b1 * bn1_scale + bn1_shift

    return {
        "w1_mat": w1_mat.astype(jnp.bfloat16),
        "b1": b1_fold.reshape(1, c1).astype(jnp.float32),
        "w2_mat": _conv_weight_to_mat(w2).astype(jnp.bfloat16),
        "b2": b2.reshape(1, c2).astype(jnp.float32),
        "bn2_scale": bn2_scale.reshape(1, c2).astype(jnp.float32),
        "bn2_shift": bn2_shift.reshape(1, c2).astype(jnp.float32),
        "w_out": w_out,                       # (n_cls, in_feat): lane-dense
        "b_out": b_out.reshape(1, n_cls),
    }


if __name__ == "__main__":
    key = jax.random.PRNGKey(0)
    kx, kp = jax.random.split(key)

    n, cin, h, w = 2, 3, 16, 16          # small shapes; conv1 requires cin=3
    x = jax.random.normal(kx, (n, cin, h, w), jnp.float32)
    params = init_params(kp, h, w)

    fwd = jax.jit(cnn_forward)
    out, feat = fwd(x, params)
    jax.block_until_ready((out, feat))

    assert out.shape == (n, 2)
    assert feat.shape == (n, 32 * (h // 4) * (w // 4))
    assert bool(jnp.all(jnp.isfinite(out))) and bool(jnp.all(jnp.isfinite(feat)))
    print("KERNEL_OK")
</pallas_src>

<mosaic_0001>
module attributes {stable_mosaic.version = 11 : i64} {
  func.func @kernel(%arg0: i32, %arg1: i32, %arg2: memref<1x64x75xbf16, #tpu.memory_space<vmem>>, %arg3: memref<1x64x75xbf16, #tpu.memory_space<vmem>>, %arg4: memref<1x64x75xbf16, #tpu.memory_space<vmem>>, %arg5: memref<1x64x75xbf16, #tpu.memory_space<vmem>>, %arg6: memref<75x16xbf16, #tpu.memory_space<vmem>>, %arg7: memref<1x16xf32, #tpu.memory_space<vmem>>, %arg8: memref<1x64x16xbf16, #tpu.memory_space<vmem>>) attributes {dimension_semantics = [#tpu.dimension_semantics<parallel>, #tpu.dimension_semantics<parallel>], iteration_bounds = array<i64: 2, 1>, scalar_prefetch = 0 : i64, scratch_operands = 0 : i64, tpu.core_type = #tpu.core_type<tc>, window_params = [{transform_indices = @transform_0, window_bounds = array<i64: 1, 64, 75>}, {transform_indices = @transform_1, window_bounds = array<i64: 1, 64, 75>}, {transform_indices = @transform_2, window_bounds = array<i64: 1, 64, 75>}, {transform_indices = @transform_3, window_bounds = array<i64: 1, 64, 75>}, {pipeline_mode = #tpu.pipeline_mode<synchronous>, transform_indices = @transform_4, window_bounds = array<i64: 75, 16>}, {pipeline_mode = #tpu.pipeline_mode<synchronous>, transform_indices = @transform_5, window_bounds = array<i64: 1, 16>}, {transform_indices = @transform_6, window_bounds = array<i64: 1, 64, 16>}]} {
    %c0 = arith.constant 0 : index
    %c0_0 = arith.constant 0 : index
    %0 = vector.load %arg6[%c0, %c0_0] : memref<75x16xbf16, #tpu.memory_space<vmem>>, vector<75x16xbf16>
    %c0_1 = arith.constant 0 : index
    %c0_2 = arith.constant 0 : index
    %1 = vector.load %arg7[%c0_1, %c0_2] : memref<1x16xf32, #tpu.memory_space<vmem>>, vector<1x16xf32>
    %c0_3 = arith.constant 0 : index
    %c0_4 = arith.constant 0 : index
    %c0_5 = arith.constant 0 : index
    %2 = vector.load %arg2[%c0_3, %c0_4, %c0_5] : memref<1x64x75xbf16, #tpu.memory_space<vmem>>, vector<1x64x75xbf16>
    %3 = vector.shape_cast %2 : vector<1x64x75xbf16> to vector<64x75xbf16>
    %cst = arith.constant dense<0.000000e+00> : vector<64x16xf32>
    %4 = tpu.matmul %3, %0, %cst {dimension_numbers = #tpu.dot_dimension_numbers<[1], [0], [0], [1], [0, 0, 1, 1], [], []>} : vector<64x75xbf16>, vector<75x16xbf16>, vector<64x16xf32> -> vector<64x16xf32>
    %5 = vector.broadcast %1 : vector<1x16xf32> to vector<64x16xf32>
    %6 = arith.addf %4, %5 : vector<64x16xf32>
    %cst_6 = arith.constant 0.000000e+00 : f32
    %7 = vector.broadcast %cst_6 : f32 to vector<64x16xf32>
    %8 = arith.maximumf %6, %7 : vector<64x16xf32>
    %c0_7 = arith.constant 0 : index
    %c0_8 = arith.constant 0 : index
    %c0_9 = arith.constant 0 : index
    %9 = vector.load %arg3[%c0_7, %c0_8, %c0_9] : memref<1x64x75xbf16, #tpu.memory_space<vmem>>, vector<1x64x75xbf16>
    %10 = vector.shape_cast %9 : vector<1x64x75xbf16> to vector<64x75xbf16>
    %cst_10 = arith.constant dense<0.000000e+00> : vector<64x16xf32>
    %11 = tpu.matmul %10, %0, %cst_10 {dimension_numbers = #tpu.dot_dimension_numbers<[1], [0], [0], [1], [0, 0, 1, 1], [], []>} : vector<64x75xbf16>, vector<75x16xbf16>, vector<64x16xf32> -> vector<64x16xf32>
    %12 = vector.broadcast %1 : vector<1x16xf32> to vector<64x16xf32>
    %13 = arith.addf %11, %12 : vector<64x16xf32>
    %cst_11 = arith.constant 0.000000e+00 : f32
    %14 = vector.broadcast %cst_11 : f32 to vector<64x16xf32>
    %15 = arith.maximumf %13, %14 : vector<64x16xf32>
    %16 = arith.maximumf %8, %15 : vector<64x16xf32>
    %c0_12 = arith.constant 0 : index
    %c0_13 = arith.constant 0 : index
    %c0_14 = arith.constant 0 : index
    %17 = vector.load %arg4[%c0_12, %c0_13, %c0_14] : memref<1x64x75xbf16, #tpu.memory_space<vmem>>, vector<1x64x75xbf16>
    %18 = vector.shape_cast %17 : vector<1x64x75xbf16> to vector<64x75xbf16>
    %cst_15 = arith.constant dense<0.000000e+00> : vector<64x16xf32>
    %19 = tpu.matmul %18, %0, %cst_15 {dimension_numbers = #tpu.dot_dimension_numbers<[1], [0], [0], [1], [0, 0, 1, 1], [], []>} : vector<64x75xbf16>, vector<75x16xbf16>, vector<64x16xf32> -> vector<64x16xf32>
    %20 = vector.broadcast %1 : vector<1x16xf32> to vector<64x16xf32>
    %21 = arith.addf %19, %20 : vector<64x16xf32>
    %cst_16 = arith.constant 0.000000e+00 : f32
    %22 = vector.broadcast %cst_16 : f32 to vector<64x16xf32>
    %23 = arith.maximumf %21, %22 : vector<64x16xf32>
    %24 = arith.maximumf %16, %23 : vector<64x16xf32>
    %c0_17 = arith.constant 0 : index
    %c0_18 = arith.constant 0 : index
    %c0_19 = arith.constant 0 : index
    %25 = vector.load %arg5[%c0_17, %c0_18, %c0_19] : memref<1x64x75xbf16, #tpu.memory_space<vmem>>, vector<1x64x75xbf16>
    %26 = vector.shape_cast %25 : vector<1x64x75xbf16> to vector<64x75xbf16>
    %cst_20 = arith.constant dense<0.000000e+00> : vector<64x16xf32>
    %27 = tpu.matmul %26, %0, %cst_20 {dimension_numbers = #tpu.dot_dimension_numbers<[1], [0], [0], [1], [0, 0, 1, 1], [], []>} : vector<64x75xbf16>, vector<75x16xbf16>, vector<64x16xf32> -> vector<64x16xf32>
    %28 = vector.broadcast %1 : vector<1x16xf32> to vector<64x16xf32>
    %29 = arith.addf %27, %28 : vector<64x16xf32>
    %cst_21 = arith.constant 0.000000e+00 : f32
    %30 = vector.broadcast %cst_21 : f32 to vector<64x16xf32>
    %31 = arith.maximumf %29, %30 : vector<64x16xf32>
    %32 = arith.maximumf %24, %31 : vector<64x16xf32>
    %33 = arith.truncf %32 : vector<64x16xf32> to vector<64x16xbf16>
    %c0_22 = arith.constant 0 : index
    %c0_23 = arith.constant 0 : index
    %c0_24 = arith.constant 0 : index
    %34 = vector.load %arg8[%c0_22, %c0_23, %c0_24] : memref<1x64x16xbf16, #tpu.memory_space<vmem>>, vector<1x64x16xbf16>
    %35 = vector.shape_cast %34 : vector<1x64x16xbf16> to vector<64x16xbf16>
    %36 = vector.shape_cast %33 : vector<64x16xbf16> to vector<1x64x16xbf16>
    tpu.vector_store %arg8[%c0_22, %c0_23, %c0_24], %36 {strides = array<i32>} : memref<1x64x16xbf16, #tpu.memory_space<vmem>>, vector<1x64x16xbf16>,
    return
  }
  func.func @transform_0(%arg0: i32, %arg1: i32) -> (i32, i32, i32) {
    %c0_i32 = arith.constant 0 : i32
    %c0_i32_0 = arith.constant 0 : i32
    return %arg0, %arg1, %c0_i32 : i32, i32, i32
  }
  func.func @transform_1(%arg0: i32, %arg1: i32) -> (i32, i32, i32) {
    %c0_i32 = arith.constant 0 : i32
    %c0_i32_0 = arith.constant 0 : i32
    return %arg0, %arg1, %c0_i32 : i32, i32, i32
  }
  func.func @transform_2(%arg0: i32, %arg1: i32) -> (i32, i32, i32) {
    %c0_i32 = arith.constant 0 : i32
    %c0_i32_0 = arith.constant 0 : i32
    return %arg0, %arg1, %c0_i32 : i32, i32, i32
  }
  func.func @transform_3(%arg0: i32, %arg1: i32) -> (i32, i32, i32) {
    %c0_i32 = arith.constant 0 : i32
    %c0_i32_0 = arith.constant 0 : i32
    return %arg0, %arg1, %c0_i32 : i32, i32, i32
  }
  func.func @transform_4(%arg0: i32, %arg1: i32) -> (i32, i32) {
    %c0_i32 = arith.constant 0 : i32
    %c0_i32_0 = arith.constant 0 : i32
    %c0_i32_1 = arith.constant 0 : i32
    return %c0_i32, %c0_i32_0 : i32, i32
  }
  func.func @transform_5(%arg0: i32, %arg1: i32) -> (i32, i32) {
    %c0_i32 = arith.constant 0 : i32
    %c0_i32_0 = arith.constant 0 : i32
    %c0_i32_1 = arith.constant 0 : i32
    return %c0_i32, %c0_i32_0 : i32, i32
  }
  func.func @transform_6(%arg0: i32, %arg1: i32) -> (i32, i32, i32) {
    %c0_i32 = arith.constant 0 : i32
    %c0_i32_0 = arith.constant 0 : i32
    return %arg0, %arg1, %c0_i32 : i32, i32, i32
  }
}

module attributes {stable_mosaic.version = 11 : i64} {
  func.func @kernel(%arg0: i32, %arg1: i32, %arg2: memref<1x16x400xbf16, #tpu.memory_space<vmem>>, %arg3: memref<1x16x400xbf16, #tpu.memory_space<vmem>>, %arg4: memref<1x16x400xbf16, #tpu.memory_space<vmem>>, %arg5: memref<1x16x400xbf16, #tpu.memory_space<vmem>>, %arg6: memref<400x32xbf16, #tpu.memory_space<vmem>>, %arg7: memref<1x32xf32, #tpu.memory_space<vmem>>, %arg8: memref<1x32xf32, #tpu.memory_space<vmem>>, %arg9: memref<1x32xf32, #tpu.memory_space<vmem>>, %arg10: memref<1x16x32xf32, #tpu.memory_space<vmem>>) attributes {dimension_semantics = [#tpu.dimension_semantics<parallel>, #tpu.dimension_semantics<parallel>], iteration_bounds = array<i64: 2, 1>, scalar_prefetch = 0 : i64, scratch_operands = 0 : i64, tpu.core_type = #tpu.core_type<tc>, window_params = [{transform_indices = @transform_0, window_bounds = array<i64: 1, 16, 400>}, {transform_indices = @transform_1, window_bounds = array<i64: 1, 16, 400>}, {transform_indices = @transform_2, window_bounds = array<i64: 1, 16, 400>}, {transform_indices = @transform_3, window_bounds = array<i64: 1, 16, 400>}, {pipeline_mode = #tpu.pipeline_mode<synchronous>, transform_indices = @transform_4, window_bounds = array<i64: 400, 32>}, {pipeline_mode = #tpu.pipeline_mode<synchronous>, transform_indices = @transform_5, window_bounds = array<i64: 1, 32>}, {pipeline_mode = #tpu.pipeline_mode<synchronous>, transform_indices = @transform_6, window_bounds = array<i64: 1, 32>}, {pipeline_mode = #tpu.pipeline_mode<synchronous>, transform_indices = @transform_7, window_bounds = array<i64: 1, 32>}, {transform_indices = @transform_8, window_bounds = array<i64: 1, 16, 32>}]} {
    %c0 = arith.constant 0 : index
    %c0_0 = arith.constant 0 : index
    %0 = vector.load %arg6[%c0, %c0_0] : memref<400x32xbf16, #tpu.memory_space<vmem>>, vector<400x32xbf16>
    %c0_1 = arith.constant 0 : index
    %c0_2 = arith.constant 0 : index
    %1 = vector.load %arg7[%c0_1, %c0_2] : memref<1x32xf32, #tpu.memory_space<vmem>>, vector<1x32xf32>
    %c0_3 = arith.constant 0 : index
    %c0_4 = arith.constant 0 : index
    %c0_5 = arith.constant 0 : index
    %2 = vector.load %arg2[%c0_3, %c0_4, %c0_5] : memref<1x16x400xbf16, #tpu.memory_space<vmem>>, vector<1x16x400xbf16>
    %3 = vector.shape_cast %2 : vector<1x16x400xbf16> to vector<16x400xbf16>
    %cst = arith.constant dense<0.000000e+00> : vector<16x32xf32>
    %4 = tpu.matmul %3, %0, %cst {dimension_numbers = #tpu.dot_dimension_numbers<[1], [0], [0], [1], [0, 0, 1, 1], [], []>} : vector<16x400xbf16>, vector<400x32xbf16>, vector<16x32xf32> -> vector<16x32xf32>
    %5 = vector.broadcast %1 : vector<1x32xf32> to vector<16x32xf32>
    %6 = arith.addf %4, %5 : vector<16x32xf32>
    %cst_6 = arith.constant 0.000000e+00 : f32
    %7 = vector.broadcast %cst_6 : f32 to vector<16x32xf32>
    %8 = arith.maximumf %6, %7 : vector<16x32xf32>
    %c0_7 = arith.constant 0 : index
    %c0_8 = arith.constant 0 : index
    %c0_9 = arith.constant 0 : index
    %9 = vector.load %arg3[%c0_7, %c0_8, %c0_9] : memref<1x16x400xbf16, #tpu.memory_space<vmem>>, vector<1x16x400xbf16>
    %10 = vector.shape_cast %9 : vector<1x16x400xbf16> to vector<16x400xbf16>
    %cst_10 = arith.constant dense<0.000000e+00> : vector<16x32xf32>
    %11 = tpu.matmul %10, %0, %cst_10 {dimension_numbers = #tpu.dot_dimension_numbers<[1], [0], [0], [1], [0, 0, 1, 1], [], []>} : vector<16x400xbf16>, vector<400x32xbf16>, vector<16x32xf32> -> vector<16x32xf32>
    %12 = vector.broadcast %1 : vector<1x32xf32> to vector<16x32xf32>
    %13 = arith.addf %11, %12 : vector<16x32xf32>
    %cst_11 = arith.constant 0.000000e+00 : f32
    %14 = vector.broadcast %cst_11 : f32 to vector<16x32xf32>
    %15 = arith.maximumf %13, %14 : vector<16x32xf32>
    %16 = arith.maximumf %8, %15 : vector<16x32xf32>
    %c0_12 = arith.constant 0 : index
    %c0_13 = arith.constant 0 : index
    %c0_14 = arith.constant 0 : index
    %17 = vector.load %arg4[%c0_12, %c0_13, %c0_14] : memref<1x16x400xbf16, #tpu.memory_space<vmem>>, vector<1x16x400xbf16>
    %18 = vector.shape_cast %17 : vector<1x16x400xbf16> to vector<16x400xbf16>
    %cst_15 = arith.constant dense<0.000000e+00> : vector<16x32xf32>
    %19 = tpu.matmul %18, %0, %cst_15 {dimension_numbers = #tpu.dot_dimension_numbers<[1], [0], [0], [1], [0, 0, 1, 1], [], []>} : vector<16x400xbf16>, vector<400x32xbf16>, vector<16x32xf32> -> vector<16x32xf32>
    %20 = vector.broadcast %1 : vector<1x32xf32> to vector<16x32xf32>
    %21 = arith.addf %19, %20 : vector<16x32xf32>
    %cst_16 = arith.constant 0.000000e+00 : f32
    %22 = vector.broadcast %cst_16 : f32 to vector<16x32xf32>
    %23 = arith.maximumf %21, %22 : vector<16x32xf32>
    %24 = arith.maximumf %16, %23 : vector<16x32xf32>
    %c0_17 = arith.constant 0 : index
    %c0_18 = arith.constant 0 : index
    %c0_19 = arith.constant 0 : index
    %25 = vector.load %arg5[%c0_17, %c0_18, %c0_19] : memref<1x16x400xbf16, #tpu.memory_space<vmem>>, vector<1x16x400xbf16>
    %26 = vector.shape_cast %25 : vector<1x16x400xbf16> to vector<16x400xbf16>
    %cst_20 = arith.constant dense<0.000000e+00> : vector<16x32xf32>
    %27 = tpu.matmul %26, %0, %cst_20 {dimension_numbers = #tpu.dot_dimension_numbers<[1], [0], [0], [1], [0, 0, 1, 1], [], []>} : vector<16x400xbf16>, vector<400x32xbf16>, vector<16x32xf32> -> vector<16x32xf32>
    %28 = vector.broadcast %1 : vector<1x32xf32> to vector<16x32xf32>
    %29 = arith.addf %27, %28 : vector<16x32xf32>
    %cst_21 = arith.constant 0.000000e+00 : f32
    %30 = vector.broadcast %cst_21 : f32 to vector<16x32xf32>
    %31 = arith.maximumf %29, %30 : vector<16x32xf32>
    %32 = arith.maximumf %24, %31 : vector<16x32xf32>
    %c0_22 = arith.constant 0 : index
    %c0_23 = arith.constant 0 : index
    %33 = vector.load %arg8[%c0_22, %c0_23] : memref<1x32xf32, #tpu.memory_space<vmem>>, vector<1x32xf32>
    %34 = vector.broadcast %33 : vector<1x32xf32> to vector<16x32xf32>
    %35 = arith.mulf %32, %34 : vector<16x32xf32>
    %c0_24 = arith.constant 0 : index
    %c0_25 = arith.constant 0 : index
    %36 = vector.load %arg9[%c0_24, %c0_25] : memref<1x32xf32, #tpu.memory_space<vmem>>, vector<1x32xf32>
    %37 = vector.broadcast %36 : vector<1x32xf32> to vector<16x32xf32>
    %38 = arith.addf %35, %37 : vector<16x32xf32>
    %c0_26 = arith.constant 0 : index
    %c0_27 = arith.constant 0 : index
    %c0_28 = arith.constant 0 : index
    %39 = vector.load %arg10[%c0_26, %c0_27, %c0_28] : memref<1x16x32xf32, #tpu.memory_space<vmem>>, vector<1x16x32xf32>
    %40 = vector.shape_cast %39 : vector<1x16x32xf32> to vector<16x32xf32>
    %41 = vector.shape_cast %38 : vector<16x32xf32> to vector<1x16x32xf32>
    tpu.vector_store %arg10[%c0_26, %c0_27, %c0_28], %41 {strides = array<i32>} : memref<1x16x32xf32, #tpu.memory_space<vmem>>, vector<1x16x32xf32>,
    return
  }
  func.func @transform_0(%arg0: i32, %arg1: i32) -> (i32, i32, i32) {
    %c0_i32 = arith.constant 0 : i32
    %c0_i32_0 = arith.constant 0 : i32
    return %arg0, %arg1, %c0_i32 : i32, i32, i32
  }
  func.func @transform_1(%arg0: i32, %arg1: i32) -> (i32, i32, i32) {
    %c0_i32 = arith.constant 0 : i32
    %c0_i32_0 = arith.constant 0 : i32
    return %arg0, %arg1, %c0_i32 : i32, i32, i32
  }
  func.func @transform_2(%arg0: i32, %arg1: i32) -> (i32, i32, i32) {
    %c0_i32 = arith.constant 0 : i32
    %c0_i32_0 = arith.constant 0 : i32
    return %arg0, %arg1, %c0_i32 : i32, i32, i32
  }
  func.func @transform_3(%arg0: i32, %arg1: i32) -> (i32, i32, i32) {
    %c0_i32 = arith.constant 0 : i32
    %c0_i32_0 = arith.constant 0 : i32
    return %arg0, %arg1, %c0_i32 : i32, i32, i32
  }
  func.func @transform_4(%arg0: i32, %arg1: i32) -> (i32, i32) {
    %c0_i32 = arith.constant 0 : i32
    %c0_i32_0 = arith.constant 0 : i32
    %c0_i32_1 = arith.constant 0 : i32
    return %c0_i32, %c0_i32_0 : i32, i32
  }
  func.func @transform_5(%arg0: i32, %arg1: i32) -> (i32, i32) {
    %c0_i32 = arith.constant 0 : i32
    %c0_i32_0 = arith.constant 0 : i32
    %c0_i32_1 = arith.constant 0 : i32
    return %c0_i32, %c0_i32_0 : i32, i32
  }
  func.func @transform_6(%arg0: i32, %arg1: i32) -> (i32, i32) {
    %c0_i32 = arith.constant 0 : i32
    %c0_i32_0 = arith.constant 0 : i32
    %c0_i32_1 = arith.constant 0 : i32
    return %c0_i32, %c0_i32_0 : i32, i32
  }
  func.func @transform_7(%arg0: i32, %arg1: i32) -> (i32, i32) {
    %c0_i32 = arith.constant 0 : i32
    %c0_i32_0 = arith.constant 0 : i32
    %c0_i32_1 = arith.constant 0 : i32
    return %c0_i32, %c0_i32_0 : i32, i32
  }
  func.func @transform_8(%arg0: i32, %arg1: i32) -> (i32, i32, i32) {
    %c0_i32 = arith.constant 0 : i32
    %c0_i32_0 = arith.constant 0 : i32
    return %arg0, %arg1, %c0_i32 : i32, i32, i32
  }
}

module attributes {stable_mosaic.version = 11 : i64} {
  func.func @_linear_kernel(%arg0: memref<2x512xf32, #tpu.memory_space<vmem>>, %arg1: memref<2x512xf32, #tpu.memory_space<vmem>>, %arg2: memref<1x2xf32, #tpu.memory_space<vmem>>, %arg3: memref<2x2xf32, #tpu.memory_space<vmem>>) attributes {dimension_semantics = [], scalar_prefetch = 0 : i64, scratch_operands = 0 : i64, tpu.core_type = #tpu.core_type<tc>} {
    %c0 = arith.constant 0 : index
    %c0_0 = arith.constant 0 : index
    %0 = vector.load %arg0[%c0, %c0_0] : memref<2x512xf32, #tpu.memory_space<vmem>>, vector<2x512xf32>
    %c0_1 = arith.constant 0 : index
    %c0_2 = arith.constant 0 : index
    %1 = vector.load %arg1[%c0_1, %c0_2] : memref<2x512xf32, #tpu.memory_space<vmem>>, vector<2x512xf32>
    %cst = arith.constant dense<0.000000e+00> : vector<2x2xf32>
    %2 = tpu.matmul %0, %1, %cst {dimension_numbers = #tpu.dot_dimension_numbers<[1], [1], [0], [0], [0, 0, 1, 0], [], []>} : vector<2x512xf32>, vector<2x512xf32>, vector<2x2xf32> -> vector<2x2xf32>
    %c0_3 = arith.constant 0 : index
    %c0_4 = arith.constant 0 : index
    %3 = vector.load %arg2[%c0_3, %c0_4] : memref<1x2xf32, #tpu.memory_space<vmem>>, vector<1x2xf32>
    %4 = vector.broadcast %3 : vector<1x2xf32> to vector<2x2xf32>
    %5 = arith.addf %2, %4 : vector<2x2xf32>
    %c0_5 = arith.constant 0 : index
    %c0_6 = arith.constant 0 : index
    %6 = vector.load %arg3[%c0_5, %c0_6] : memref<2x2xf32, #tpu.memory_space<vmem>>, vector<2x2xf32>
    tpu.vector_store %arg3[%c0_5, %c0_6], %5 {strides = array<i32>} : memref<2x2xf32, #tpu.memory_space<vmem>>, vector<2x2xf32>,
    return
  }
}

</mosaic_0001>

<bundles_post_ra>
// kernel: cnn_forward.3
= control target key start
LH: loop header
LB: loop body
LE: loop exit
PB: predicated region body
PF: predicated region fallthrough
CT: control target
= control target key end

     0   :  { %s1170_s21 = smov 0   ;;  %s1172_s22 = smov 0   ;;  %s1336_s0 = inlined_call_operand.vmem [shape: bf16[2,64,75], index: 0, kind: input, shape index: {}]   ;;  %s1337_s1 = inlined_call_operand.vmem [shape: bf16[2,64,75], index: 1, kind: input, shape index: {}]   ;;  %s1338_s2 = inlined_call_operand.vmem [shape: bf16[2,64,75], index: 2, kind: input, shape index: {}]   ;;  %s1339_s3 = inlined_call_operand.vmem [shape: bf16[2,64,75], index: 3, kind: input, shape index: {}]   ;;  %s1340_s4 = inlined_call_operand.vmem [shape: bf16[75,16], index: 4, kind: input, shape index: {}]   ;;  %s1341_s5 = inlined_call_operand.vmem [shape: f32[1,16], index: 5, kind: input, shape index: {}]   ;;  %s1342_s6 = inlined_call_operand.vmem [shape: bf16[2,64,16], index: 6, kind: output, shape index: {}]  }
   0x1   :  { %s1174_s23 = smov 0  }
   0x2 LB: > { %s28_s24 = sadd.s32 1, %s1128_s22  ;;  %p945_p0 = scmp.ge.s32.totalorder %s1132_s23, 1  ;;  %s1132_s23 = sphi %s1174_s23, %s16_s23   ;;  %s1128_s22 = sphi %s1172_s22, %s1344_s22   ;;  %s1124_s21 = sphi %s1170_s21, %s1343_s21  }
   0x3   : > { %p30_p1 = scmp.ge.s32.totalorder %s28_s24, 2  ;;  %p284_p2 = scmp.lt.s32.totalorder %s1132_s23, 3 }
   0x5   : > { %s1346_s24 = smov (%p30_p1, %s28_s24), 0  ;;  %p285_p3 = pnand %p945_p0, %p284_p2 }
   0x6   : > { %p350_p4 = scmp.lt.s32.totalorder (!%p285_p3), %s1124_s21, 1 }
   0x7   : > { %288 = sbr.rel (%p285_p3) target bundleno = 237 (0xed), region = 44 }
   0xc   : > { %v990_v0 = vld [vmem:[%s1340_s4 + $0x20] sm:$0xf]  ;;  %v1067_v1 = vld [vmem:[%s1340_s4 + $0x20] sm:$0x30]  ;;  %vm484_vm0 = vcmask 1044480   ;;  %vm485_vm1 = vcmask 1045504  }
   0xd   : > { %v991_v2 = vor.u32 %v1067_v1, %v990_v0  ;;  %v1134_v3 = vmov 65535   ;;  %v1066_v7 = vld [vmem:[%s1340_s4 + $0x18] sm:$0xff]  ;;  %v1065_v8 = vld [vmem:[%s1340_s4 + $0x10] sm:$0xff]  ;;  %s1348_s21 = smov (!%p350_p4, %s1124_s21), 1  ;;  %v1064_v9 = vld [vmem:[%s1340_s4 + $0x8] sm:$0xff]  ;;  %vm471_vm2 = vcmask 613376  }
   0xe   : > { %v486_v4 = vsel %vm484_vm0, 4294967295, %v1134_v3  ;;  %s1207_s11 = sshll.u32 %s1348_s21, 5  ;;  %v1063_v10 = vld [vmem:[%s1340_s4] sm:$0xff]  ;;  %vm791_vm3 = vcmask 125952  }
   0xf   : > { %v487_v5 = vsel %vm485_vm1, %v486_v4, 0  ;;  %s1216_s16 = scalar_lea.vmem %s1336_s0, %s1207_s11  ;;  %s1222_s19 = scalar_lea.vmem %s1337_s1, %s1207_s11  ;;  %v1271_v27 = vld [vmem:[%s1341_s5] ss:$0 sm:$0xff] }
  0x10   : > { %v489_v6 = vand.u32 %v991_v2, %v487_v5  ;;  %s1228_s25 = scalar_lea.vmem %s1338_s2, %s1207_s11  ;;  %s1234_s28 = scalar_lea.vmem %s1339_s3, %s1207_s11  ;;  %v1068_v11 = vld [vmem:[%s1216_s16] sm:$0xff]  ;;  %v1069_v15 = vld [vmem:[%s1216_s16 + $0x8] sm:$0xff]  ;;  %v1070_v19 = vld [vmem:[%s1216_s16 + $0x10] sm:$0xff] }
  0x11   : > { %v1072_v12 = vld [vmem:[%s1222_s19] sm:$0xff]  ;;  %v1073_v16 = vld [vmem:[%s1222_s19 + $0x8] sm:$0xff]  ;;  %v1074_v20 = vld [vmem:[%s1222_s19 + $0x10] sm:$0xff]  ;;  %s1283_s9 = scalar_lea.vmem %s1342_s6, %s1207_s11 }
  0x12   : > { %494 = vmatpush.bf16.msra.mxu0 %v489_v6  ;;  %571 = vmatpush.bf16.msra.mxu1 %v489_v6  ;;  %v1076_v13 = vld [vmem:[%s1228_s25] sm:$0xff]  ;;  %v1077_v17 = vld [vmem:[%s1228_s25 + $0x8] sm:$0xff]  ;;  %v1078_v21 = vld [vmem:[%s1228_s25 + $0x10] sm:$0xff] }
  0x13   : > { %656 = vmatpush.bf16.msra.mxu2 %v489_v6  ;;  %741 = vmatpush.bf16.msra.mxu3 %v489_v6  ;;  %v1080_v14 = vld [vmem:[%s1234_s28] sm:$0xff]  ;;  %v1081_v18 = vld [vmem:[%s1234_s28 + $0x8] sm:$0xff]  ;;  %v1082_v22 = vld [vmem:[%s1234_s28 + $0x10] sm:$0xff] }
  0x14   : > { %v1071_v23 = vld [vmem:[%s1216_s16 + $0x18] sm:$0xff] }
  0x15   : > { %v1075_v24 = vld [vmem:[%s1222_s19 + $0x18] sm:$0xff] }
  0x16   : > { %495 = vmatpush.bf16.msra.mxu0 %v1066_v7  ;;  %572 = vmatpush.bf16.msra.mxu1 %v1066_v7  ;;  %v1079_v25 = vld [vmem:[%s1228_s25 + $0x18] sm:$0xff] }
  0x17   : > { %657 = vmatpush.bf16.msra.mxu2 %v1066_v7  ;;  %742 = vmatpush.bf16.msra.mxu3 %v1066_v7  ;;  %v1083_v26 = vld [vmem:[%s1234_s28 + $0x18] sm:$0xff] }
  0x1a   : > { %496 = vmatpush.bf16.msra.mxu0 %v1065_v8  ;;  %573 = vmatpush.bf16.msra.mxu1 %v1065_v8 }
  0x1b   : > { %658 = vmatpush.bf16.msra.mxu2 %v1065_v8  ;;  %743 = vmatpush.bf16.msra.mxu3 %v1065_v8 }
  0x1e   : > { %497 = vmatpush.bf16.msra.mxu0 %v1064_v9  ;;  %574 = vmatpush.bf16.msra.mxu1 %v1064_v9 }
  0x1f   : > { %659 = vmatpush.bf16.msra.mxu2 %v1064_v9  ;;  %744 = vmatpush.bf16.msra.mxu3 %v1064_v9 }
  0x22   : > { %498 = vmatpush.bf16.msra.mxu0 %v1063_v10  ;;  %575 = vmatpush.bf16.msra.mxu1 %v1063_v10 }
  0x23   : > { %660 = vmatpush.bf16.msra.mxu2 %v1063_v10  ;;  %745 = vmatpush.bf16.msra.mxu3 %v1063_v10 }
  0x25   : > { %992 = vmatmul.msk.bf16.vlgmr.msra.gmra.mxu0 %vm471_vm2, %v1068_v11  ;;  %1012 = vmatmul.msk.bf16.vlgmr.msra.gmra.mxu1 %vm471_vm2, %v1072_v12 }
  0x26   : > { %1032 = vmatmul.msk.bf16.vlgmr.msra.gmra.mxu2 %vm471_vm2, %v1076_v13  ;;  %1052 = vmatmul.msk.bf16.vlgmr.msra.gmra.mxu3 %vm471_vm2, %v1080_v14 }
  0x35   : > { %993 = vmatmul.msk.bf16.gmra.mxu0 %vm471_vm2, %v1069_v15  ;;  %1013 = vmatmul.msk.bf16.gmra.mxu1 %vm471_vm2, %v1073_v16 }
  0x36   : > { %1033 = vmatmul.msk.bf16.gmra.mxu2 %vm471_vm2, %v1077_v17  ;;  %1053 = vmatmul.msk.bf16.gmra.mxu3 %vm471_vm2, %v1081_v18 }
  0x45   : > { %994 = vmatmul.msk.bf16.gmra.mxu0 %vm471_vm2, %v1070_v19  ;;  %1014 = vmatmul.msk.bf16.gmra.mxu1 %vm471_vm2, %v1074_v20 }
  0x46   : > { %1034 = vmatmul.msk.bf16.gmra.mxu2 %vm471_vm2, %v1078_v21  ;;  %1054 = vmatmul.msk.bf16.gmra.mxu3 %vm471_vm2, %v1082_v22 }
  0x55   : > { %995 = vmatmul.msk.bf16.gmra.mxu0 %vm471_vm2, %v1071_v23  ;;  %1015 = vmatmul.msk.bf16.gmra.mxu1 %vm471_vm2, %v1075_v24 }
  0x56   : > { %1035 = vmatmul.msk.bf16.gmra.mxu2 %vm471_vm2, %v1079_v25  ;;  %1055 = vmatmul.msk.bf16.gmra.mxu3 %vm471_vm2, %v1083_v26 }
  0xa2   : > { %v500_v28 = vpop.f32.mrf.mxu0  ;;  %v577_v29 = vpop.f32.mrf.mxu1 }
  0xa3   : > { %v501_v30 = vadd.f32 %v1271_v27, %v500_v28  ;;  %v578_v31 = vadd.f32 %v1271_v27, %v577_v29 }
  0xa5   : > { %v520_v32 = vmax.f32 %v501_v30, 0.0  ;;  %v597_v33 = vmax.f32 %v578_v31, 0.0 }
  0xa7   : > { %v605_v36 = vmax.f32 %v520_v32, %v597_v33 }
  0xa9   : > { %v662_v34 = vpop.f32.mrf.mxu2  ;;  %v747_v35 = vpop.f32.mrf.mxu3 }
  0xaa   : > { %v663_v37 = vadd.f32 %v1271_v27, %v662_v34  ;;  %v748_v38 = vadd.f32 %v1271_v27, %v747_v35  ;;  %v502_v39 = vpop.f32.mrf.mxu0  ;;  %v579_v40 = vpop.f32.mrf.mxu1 }
  0xab   : > { %v503_v43 = vadd.f32 %v1271_v27, %v502_v39  ;;  %v580_v44 = vadd.f32 %v1271_v27, %v579_v40 }
  0xac   : > { %v682_v41 = vmax.f32 %v663_v37, 0.0  ;;  %v767_v42 = vmax.f32 %v748_v38, 0.0 }
  0xad   : > { %v521_v47 = vmax.f32 %v503_v43, 0.0  ;;  %v598_v48 = vmax.f32 %v580_v44, 0.0 }
  0xae   : > { %v690_v45 = vmax.f32 %v605_v36, %v682_v41 }
  0xaf   : > { %v606_v58 = vmax.f32 %v521_v47, %v598_v48 }
  0xb0   : > { %v775_v46 = vmax.f32 %v690_v45, %v767_v42 }
  0xb1   : > { %v664_v49 = vpop.f32.mrf.mxu2  ;;  %v749_v50 = vpop.f32.mrf.mxu3 }
  0xb2   : > { %v783_v51 = vpack.c.bf16 %v775_v46, %v775_v46  ;;  %v665_v52 = vadd.f32 %v1271_v27, %v664_v49  ;;  %v750_v53 = vadd.f32 %v1271_v27, %v749_v50  ;;  %v505_v54 = vpop.f32.mrf.mxu0  ;;  %v582_v55 = vpop.f32.mrf.mxu1 }
  0xb3   : > { %v506_v56 = vadd.f32 %v1271_v27, %v505_v54  ;;  %v583_v57 = vadd.f32 %v1271_v27, %v582_v55 }
  0xb4   : > { %792 = vst.msk [vmem:[%s1283_s9] sm:$0xf] %vm791_vm3, %v783_v51  ;;  %v683_v59 = vmax.f32 %v665_v52, 0.0  ;;  %v768_v61 = vmax.f32 %v750_v53, 0.0 }
  0xb5   : > { %v522_v62 = vmax.f32 %v506_v56, 0.0  ;;  %v599_v63 = vmax.f32 %v583_v57, 0.0 }
  0xb6   : > { %v691_v60 = vmax.f32 %v606_v58, %v683_v59 }
  0xb7   : > { %v607_v4 = vmax.f32 %v522_v62, %v599_v63 }
  0xb8   : > { %v776_v0 = vmax.f32 %v691_v60, %v768_v61 }
  0xb9   : > { %v667_v1 = vpop.f32.mrf.mxu2  ;;  %v752_v2 = vpop.f32.mrf.mxu3 }
  0xba   : > { %v784_v3 = vpack.c.bf16 %v776_v0, %v776_v0  ;;  %v668_v5 = vadd.f32 %v1271_v27, %v667_v1  ;;  %v753_v6 = vadd.f32 %v1271_v27, %v752_v2  ;;  %v507_v7 = vpop.f32.mrf.mxu0  ;;  %v584_v8 = vpop.f32.mrf.mxu1 }
  0xbb   : > { %v508_v11 = vadd.f32 %v1271_v27, %v507_v7  ;;  %v585_v12 = vadd.f32 %v1271_v27, %v584_v8 }
  0xbc   : > { %793 = vst.msk [vmem:[%s1283_s9 + $0x4] sm:$0xf] %vm791_vm3, %v784_v3  ;;  %v684_v9 = vmax.f32 %v668_v5, 0.0  ;;  %v769_v10 = vmax.f32 %v753_v6, 0.0 }
  0xbd   : > { %v523_v15 = vmax.f32 %v508_v11, 0.0  ;;  %v600_v16 = vmax.f32 %v585_v12, 0.0 }
  0xbe   : > { %v692_v13 = vmax.f32 %v607_v4, %v684_v9 }
  0xbf   : > { %v608_v26 = vmax.f32 %v523_v15, %v600_v16 }
  0xc0   : > { %v777_v14 = vmax.f32 %v692_v13, %v769_v10 }
  0xc1   : > { %v669_v17 = vpop.f32.mrf.mxu2  ;;  %v754_v18 = vpop.f32.mrf.mxu3 }
  0xc2   : > { %v785_v19 = vpack.c.bf16 %v777_v14, %v777_v14  ;;  %v670_v20 = vadd.f32 %v1271_v27, %v669_v17  ;;  %v755_v21 = vadd.f32 %v1271_v27, %v754_v18  ;;  %v510_v22 = vpop.f32.mrf.mxu0  ;;  %v587_v23 = vpop.f32.mrf.mxu1 }
  0xc3   : > { %v511_v24 = vadd.f32 %v1271_v27, %v510_v22  ;;  %v588_v25 = vadd.f32 %v1271_v27, %v587_v23 }
  0xc4   : > { %794 = vst.msk [vmem:[%s1283_s9 + $0x8] sm:$0xf] %vm791_vm3, %v785_v19  ;;  %v685_v28 = vmax.f32 %v670_v20, 0.0  ;;  %v770_v30 = vmax.f32 %v755_v21, 0.0 }
  0xc5   : > { %v524_v31 = vmax.f32 %v511_v24, 0.0  ;;  %v601_v32 = vmax.f32 %v588_v25, 0.0 }
  0xc6   : > { %v693_v29 = vmax.f32 %v608_v26, %v685_v28 }
  0xc7   : > { %v609_v37 = vmax.f32 %v524_v31, %v601_v32 }
  0xc8   : > { %v778_v33 = vmax.f32 %v693_v29, %v770_v30 }
  0xc9   : > { %v672_v34 = vpop.f32.mrf.mxu2  ;;  %v757_v35 = vpop.f32.mrf.mxu3 }
  0xca   : > { %v786_v36 = vpack.c.bf16 %v778_v33, %v778_v33  ;;  %v673_v38 = vadd.f32 %v1271_v27, %v672_v34  ;;  %v758_v39 = vadd.f32 %v1271_v27, %v757_v35  ;;  %v512_v40 = vpop.f32.mrf.mxu0  ;;  %v589_v41 = vpop.f32.mrf.mxu1 }
  0xcb   : > { %v513_v44 = vadd.f32 %v1271_v27, %v512_v40  ;;  %v590_v45 = vadd.f32 %v1271_v27, %v589_v41 }
  0xcc   : > { %795 = vst.msk [vmem:[%s1283_s9 + $0xc] sm:$0xf] %vm791_vm3, %v786_v36  ;;  %v686_v42 = vmax.f32 %v673_v38, 0.0  ;;  %v771_v43 = vmax.f32 %v758_v39, 0.0 }
  0xcd   : > { %v525_v48 = vmax.f32 %v513_v44, 0.0  ;;  %v602_v49 = vmax.f32 %v590_v45, 0.0 }
  0xce   : > { %v694_v46 = vmax.f32 %v609_v37, %v686_v42 }
  0xcf   : > { %v610_v59 = vmax.f32 %v525_v48, %v602_v49 }
  0xd0   : > { %v779_v47 = vmax.f32 %v694_v46, %v771_v43 }
  0xd1   : > { %v674_v50 = vpop.f32.mrf.mxu2  ;;  %v759_v51 = vpop.f32.mrf.mxu3 }
  0xd2   : > { %v787_v52 = vpack.c.bf16 %v779_v47, %v779_v47  ;;  %v675_v53 = vadd.f32 %v1271_v27, %v674_v50  ;;  %v760_v54 = vadd.f32 %v1271_v27, %v759_v51  ;;  %v515_v55 = vpop.f32.mrf.mxu0  ;;  %v592_v56 = vpop.f32.mrf.mxu1 }
  0xd3   : > { %v516_v57 = vadd.f32 %v1271_v27, %v515_v55  ;;  %v593_v58 = vadd.f32 %v1271_v27, %v592_v56 }
  0xd4   : > { %796 = vst.msk [vmem:[%s1283_s9 + $0x10] sm:$0xf] %vm791_vm3, %v787_v52  ;;  %v687_v60 = vmax.f32 %v675_v53, 0.0  ;;  %v772_v62 = vmax.f32 %v760_v54, 0.0 }
  0xd5   : > { %v526_v63 = vmax.f32 %v516_v57, 0.0  ;;  %v603_v0 = vmax.f32 %v593_v58, 0.0 }
  0xd6   : > { %v695_v61 = vmax.f32 %v610_v59, %v687_v60 }
  0xd7   : > { %v611_v5 = vmax.f32 %v526_v63, %v603_v0 }
  0xd8   : > { %v780_v1 = vmax.f32 %v695_v61, %v772_v62 }
  0xd9   : > { %v677_v2 = vpop.f32.mrf.mxu2  ;;  %v762_v3 = vpop.f32.mrf.mxu3 }
  0xda   : > { %v788_v4 = vpack.c.bf16 %v780_v1, %v780_v1  ;;  %v678_v6 = vadd.f32 %v1271_v27, %v677_v2  ;;  %v763_v7 = vadd.f32 %v1271_v27, %v762_v3  ;;  %v517_v8 = vpop.f32.mrf.mxu0  ;;  %v594_v9 = vpop.f32.mrf.mxu1 }
  0xdb   : > { %v518_v12 = vadd.f32 %v1271_v27, %v517_v8  ;;  %v595_v13 = vadd.f32 %v1271_v27, %v594_v9 }
  0xdc   : > { %797 = vst.msk [vmem:[%s1283_s9 + $0x14] sm:$0xf] %vm791_vm3, %v788_v4  ;;  %v688_v10 = vmax.f32 %v678_v6, 0.0  ;;  %v773_v11 = vmax.f32 %v763_v7, 0.0 }
  0xdd   : > { %v527_v16 = vmax.f32 %v518_v12, 0.0  ;;  %v604_v17 = vmax.f32 %v595_v13, 0.0 }
  0xde   : > { %v696_v14 = vmax.f32 %v611_v5, %v688_v10 }
  0xdf   : > { %v612_v23 = vmax.f32 %v527_v16, %v604_v17 }
  0xe0   : > { %v781_v15 = vmax.f32 %v696_v14, %v773_v11 }
  0xe1   : > { %v679_v18 = vpop.f32.mrf.mxu2  ;;  %v764_v19 = vpop.f32.mrf.mxu3 }
  0xe2   : > { %v789_v20 = vpack.c.bf16 %v781_v15, %v781_v15  ;;  %v680_v21 = vadd.f32 %v1271_v27, %v679_v18  ;;  %v765_v22 = vadd.f32 %v1271_v27, %v764_v19 }
  0xe4   : > { %798 = vst.msk [vmem:[%s1283_s9 + $0x18] sm:$0xf] %vm791_vm3, %v789_v20  ;;  %v689_v24 = vmax.f32 %v680_v21, 0.0  ;;  %v774_v26 = vmax.f32 %v765_v22, 0.0 }
  0xe6   : > { %v697_v25 = vmax.f32 %v612_v23, %v689_v24 }
  0xe8   : > { %v782_v28 = vmax.f32 %v697_v25, %v774_v26 }
  0xea   : > { %v790_v29 = vpack.c.bf16 %v782_v28, %v782_v28 }
  0xec   : > { %799 = vst.msk [vmem:[%s1283_s9 + $0x1c] sm:$0xf] %vm791_vm3, %v790_v29 }
  0xed PF: > { %s16_s23 = sadd.s32 1, %s1132_s23   ;;  %s1343_s21 = smov %s1128_s22 }
  0xee   : > { %p13_p5 = scmp.ge.s32.totalorder %s16_s23, 4   ;;  %s1344_s22 = smov %s1346_s24 }
  0xf0   :  { %15 = sbr.rel (!%p13_p5) target bundleno = 2 (0x2), region = 83 }

// kernel: cnn_forward.5
= control target key start
LH: loop header
LB: loop body
LE: loop exit
PB: predicated region body
PF: predicated region fallthrough
CT: control target
= control target key end

     0   :  { %s200_s0 = inlined_call_operand.vmem [shape: f32[2,512], index: 0, kind: input, shape index: {}]   ;;  %s201_s1 = inlined_call_operand.vmem [shape: f32[2,512], index: 1, kind: input, shape index: {}]   ;;  %s202_s2 = inlined_call_operand.vmem [shape: f32[1,2], index: 2, kind: input, shape index: {}]   ;;  %s203_s3 = inlined_call_operand.hbm [shape: f32[2,2], index: 3, kind: output, shape index: {}]  }
   0x1   :  { %v15_v0 = vld [vmem:[%s200_s0] sm:$0xff] }
   0x2   :  { %22 = vst [vmem:[#allocation1] ss:$4 sm:$0xff] %v15_v0 }
   0x3   :  { %8 = vsyncpa [#allocation3], 0  ;;  %v16_v1 = vld [vmem:[%s201_s1] sm:$0xff]  ;;  %s167_s1 = smov [#allocation2]   ;;  %s130_s20 = sshll.u32 %s203_s3, 4  ;;  %vm121_vm0 = vcmask 9216   ;;  %s131_s20 = int_to_ptr.hbm [resolvable:$true] %s130_s20 }
   0x4   :  { %v140_v10 = vld [vmem:[%s202_s2] ss:$0 sm:$0xff]  ;;  %s128_s17 = sshll.u32 %s167_s1, 4  ;;  %s129_s17 = int_to_ptr.vmem [resolvable:$true] %s128_s17 }
   0x9   :  { %v23_v2 = vld.sshfl [vmem:[#allocation1] sm:$0xff pattern:$0x73625140]  ;;  %v24_v3 = vld.sshfl [vmem:[#allocation1 + $0x8] sm:$0xff pattern:$0x73625140] }
   0xa   :  { %v25_v4 = vld.sshfl [vmem:[#allocation1 + $0x10] sm:$0xff pattern:$0x73625140]  ;;  %v26_v5 = vld.sshfl [vmem:[#allocation1 + $0x18] sm:$0xff pattern:$0x73625140] }
   0xb   :  { %32 = vst [vmem:[#allocation1] ss:$4 sm:$0xff] %v16_v1 }
  0x12   :  { %v35_v6 = vld.sshfl [vmem:[#allocation1 + $0x10] sm:$0xff pattern:$0x73625140]  ;;  %v33_v7 = vld.sshfl [vmem:[#allocation1] sm:$0xff pattern:$0x73625140] }
  0x13   :  { %96 = vmatpush.xpose.msra.mxu2 %v35_v6  ;;  %56 = vmatpush.xpose.msra.mxu0 %v33_v7  ;;  %v36_v8 = vld.sshfl [vmem:[#allocation1 + $0x18] sm:$0xff pattern:$0x73625140]  ;;  %v34_v9 = vld.sshfl [vmem:[#allocation1 + $0x8] sm:$0xff pattern:$0x73625140] }
  0x14   :  { %116 = vmatpush.xpose.msra.mxu3 %v36_v8  ;;  %76 = vmatpush.xpose.msra.mxu1 %v34_v9 }
  0x16   :  { %97 = vmatmul.f32.vlgmr.msra.gmra.mxu2 %v25_v4  ;;  %57 = vmatmul.f32.vlgmr.msra.gmra.mxu0 %v23_v2 }
  0x17   :  { %117 = vmatmul.f32.vlgmr.msra.gmra.mxu3 %v26_v5  ;;  %77 = vmatmul.f32.vlgmr.msra.gmra.mxu1 %v24_v3 }
  0x93   :  { %v58_v11 = vpop.f32.mrf.mxu0 }
  0x94   :  { %v59_v12 = vadd.f32 %v140_v10, %v58_v11  ;;  %v78_v13 = vpop.f32.mrf.mxu1 }
  0x96   :  { %v79_v14 = vadd.f32 %v78_v13, %v59_v12 }
  0x99   :  { %v98_v15 = vpop.f32.mrf.mxu2 }
  0x9a   :  { %v99_v16 = vadd.f32 %v98_v15, %v79_v14  ;;  %v118_v17 = vpop.f32.mrf.mxu3 }
  0x9c   :  { %v119_v18 = vadd.f32 %v118_v17, %v99_v16 }
  0x9e   :  { %122 = vst.msk [vmem:[#allocation2] sm:$0x3] %vm121_vm0, %v119_v18 }
  0x9f   :  { %133 = dma.vmem_to_hbm [thread:$0]  %s129_s17, 32, %s131_s20, [#allocation3]  }
  0xa0   :  { %165 = dma.done.wait [#allocation3], 32  }
  0xa1   :  { %166 = vsyncadd [#allocation3], 4294967264 }
  0xa2   :  { %138 = vsyncpa [#allocation3], 1 }

// kernel: cnn_forward.4
= control target key start
LH: loop header
LB: loop body
LE: loop exit
PB: predicated region body
PF: predicated region fallthrough
CT: control target
= control target key end

     0   :  { %s1508_s27 = smov 0   ;;  %s1510_s28 = smov 0   ;;  %s1828_s0 = inlined_call_operand.vmem [shape: bf16[2,16,400], index: 0, kind: input, shape index: {}]   ;;  %s1829_s1 = inlined_call_operand.vmem [shape: bf16[2,16,400], index: 1, kind: input, shape index: {}]   ;;  %s1830_s2 = inlined_call_operand.vmem [shape: bf16[2,16,400], index: 2, kind: input, shape index: {}]   ;;  %s1831_s3 = inlined_call_operand.vmem [shape: bf16[2,16,400], index: 3, kind: input, shape index: {}]   ;;  %s1832_s4 = inlined_call_operand.vmem [shape: bf16[400,32], index: 4, kind: input, shape index: {}]   ;;  %s1833_s5 = inlined_call_operand.vmem [shape: f32[1,32], index: 5, kind: input, shape index: {}]   ;;  %s1834_s6 = inlined_call_operand.vmem [shape: f32[1,32], index: 6, kind: input, shape index: {}]   ;;  %s1835_s7 = inlined_call_operand.vmem [shape: f32[1,32], index: 7, kind: input, shape index: {}]   ;;  %s1836_s8 = inlined_call_operand.vmem [shape: f32[2,16,32], index: 8, kind: output, shape index: {}]  }
   0x1   :  { %s1512_s29 = smov 0  }
   0x2 LB: > { %s30_s30 = sadd.s32 1, %s1457_s28  ;;  %p1185_p0 = scmp.ge.s32.totalorder %s1461_s29, 1  ;;  %s1461_s29 = sphi %s1512_s29, %s18_s29   ;;  %s1457_s28 = sphi %s1510_s28, %s1838_s28   ;;  %s1453_s27 = sphi %s1508_s27, %s1837_s27  }
   0x3   : > { %p32_p1 = scmp.ge.s32.totalorder %s30_s30, 2  ;;  %p338_p2 = scmp.lt.s32.totalorder %s1461_s29, 3 }
   0x5   : > { %s1840_s30 = smov (%p32_p1, %s30_s30), 0  ;;  %p339_p3 = pnand %p1185_p0, %p338_p2 }
   0x6   : > { %p412_p4 = scmp.lt.s32.totalorder (!%p339_p3), %s1453_s27, 1 }
   0x7   : > { %342 = sbr.rel (%p339_p3) target bundleno = 269 (0x10d), region = 52 }
   0xc   : > { %v1529_v0 = vld [vmem:[%s1832_s4 + $0x38] sm:$0xff]  ;;  %v1539_v2 = vld [vmem:[%s1832_s4 + $0xc0] sm:$0xff]  ;;  %v1551_v4 = vld [vmem:[%s1832_s4 + $0x30] sm:$0xff]  ;;  %s1842_s27 = smov (!%p412_p4, %s1453_s27), 1  ;;  %vm693_vm0 = vcmask 130048   ;;  %vm1025_vm1 = vcmask 261120  }
   0xd   : > { %v1534_v1 = vld [vmem:[%s1832_s4 + $0xb8] sm:$0xff]  ;;  %697 = vmatpush.bf16.msra.mxu0 %v1529_v0  ;;  %v1556_v5 = vld [vmem:[%s1832_s4 + $0xb0] sm:$0xff]  ;;  %746 = vmatpush.bf16.msra.mxu3 %v1539_v2  ;;  %s1569_s23 = sshll.u32 %s1842_s27, 5  ;;  %v1582_v7 = vld [vmem:[%s1832_s4 + $0x28] sm:$0xff]  ;;  %s1370_s25 = sshll.u32 %s1842_s27, 4 }
   0xe   : > { %v1544_v3 = vld [vmem:[%s1832_s4 + $0x78] sm:$0xff]  ;;  %725 = vmatpush.bf16.msra.mxu2 %v1534_v1  ;;  %v1565_v6 = vld [vmem:[%s1832_s4 + $0x70] sm:$0xff]  ;;  %s1575_s26 = scalar_lea.vmem %s1828_s0, %s1569_s23  ;;  %v1587_v8 = vld [vmem:[%s1832_s4 + $0xa8] sm:$0xff]  ;;  %s1693_s13 = scalar_lea.vmem %s1829_s1, %s1569_s23 }
   0xf   : > { %711 = vmatpush.bf16.msra.mxu1 %v1544_v3  ;;  %v1593_v9 = vld [vmem:[%s1832_s4 + $0x68] sm:$0xff]  ;;  %v1208_v11 = vld [vmem:[%s1575_s26 + $0x18] sm:$0xf0]  ;;  %v1603_v13 = vld [vmem:[%s1832_s4 + $0x20] sm:$0xff]  ;;  %s1747_s17 = scalar_lea.vmem %s1830_s2, %s1569_s23  ;;  %s453_s20 = scalar_lea.vmem %s1831_s3, %s1569_s23 }
  0x10   : > { %v1397_v10 = vld [vmem:[%s1575_s26 + $0xc] sm:$0xf]  ;;  %v1608_v14 = vld [vmem:[%s1832_s4 + $0xa0] sm:$0xff]  ;;  %v1623_v16 = vld [vmem:[%s1832_s4 + $0x18] sm:$0xff] }
  0x11   : > { %781 = vmatpush.bf16.msrb.mxu3 %v1529_v0  ;;  %698 = vmatpush.bf16.msra.mxu0 %v1551_v4  ;;  %v1211_v12 = vor.u32 %v1397_v10, %v1208_v11  ;;  %v1613_v15 = vld [vmem:[%s1832_s4 + $0x60] sm:$0xff]  ;;  %v1628_v17 = vld [vmem:[%s1832_s4 + $0x98] sm:$0xff]  ;;  %v1642_v19 = vld [vmem:[%s1832_s4 + $0x10] sm:$0xff] }
  0x12   : > { %726 = vmatpush.bf16.msra.mxu2 %v1556_v5  ;;  %v1634_v18 = vld [vmem:[%s1832_s4 + $0x58] sm:$0xff]  ;;  %v1647_v20 = vld [vmem:[%s1832_s4 + $0x90] sm:$0xff]  ;;  %v1661_v22 = vld [vmem:[%s1832_s4 + $0x8] sm:$0xff] }
  0x13   : > { %712 = vmatpush.bf16.msra.mxu1 %v1565_v6  ;;  %1312 = vmatmul.msk.bf16.vlgmr.msra.gmra.mxu3 %vm693_vm0, %v1211_v12  ;;  %v1653_v21 = vld [vmem:[%s1832_s4 + $0x50] sm:$0xff]  ;;  %v1666_v23 = vld [vmem:[%s1832_s4 + $0x88] sm:$0xff]  ;;  %v1678_v25 = vld [vmem:[%s1832_s4] sm:$0xff] }
  0x14   : > { %v1672_v24 = vld [vmem:[%s1832_s4 + $0x48] sm:$0xff]  ;;  %v1685_v26 = vld [vmem:[%s1832_s4 + $0x80] sm:$0xff]  ;;  %v1399_v28 = vld [vmem:[%s1575_s26 + $0x14] sm:$0xf0] }
  0x15   : > { %782 = vmatpush.bf16.msrb.mxu3 %v1551_v4  ;;  %699 = vmatpush.bf16.msra.mxu0 %v1582_v7  ;;  %v1206_v27 = vld [vmem:[%s1575_s26 + $0x8] sm:$0xf]  ;;  %v1699_v29 = vld [vmem:[%s1832_s4 + $0x40] sm:$0xff]  ;;  %v1398_v31 = vld [vmem:[%s1575_s26 + $0xc] sm:$0xf0] }
  0x16   : > { %727 = vmatpush.bf16.msra.mxu2 %v1587_v8  ;;  %v1198_v30 = vld [vmem:[%s1575_s26] sm:$0xf]  ;;  %v1207_v32 = vor.u32 %v1399_v28, %v1206_v27  ;;  %v1402_v34 = vld [vmem:[%s1693_s13 + $0xc] sm:$0xf0]  ;;  %v1396_v36 = vld [vmem:[%s1575_s26 + $0x4] sm:$0xf] }
  0x17   : > { %713 = vmatpush.bf16.msra.mxu1 %v1593_v9  ;;  %v1315_v33 = vld [vmem:[%s1693_s13] sm:$0xf]  ;;  %v1199_v35 = vor.u32 %v1398_v31, %v1198_v30  ;;  %v1200_v37 = vld [vmem:[%s1575_s26 + $0x10] sm:$0xf0]  ;;  %v1401_v40 = vld [vmem:[%s1693_s13 + $0xc] sm:$0xf] }
  0x18   : > { %v1316_v38 = vor.u32 %v1402_v34, %v1315_v33  ;;  %v1203_v39 = vor.u32 %v1396_v36, %v1200_v37  ;;  %v1325_v41 = vld [vmem:[%s1693_s13 + $0x18] sm:$0xf0]  ;;  %v1400_v43 = vld [vmem:[%s1693_s13 + $0x4] sm:$0xf]  ;;  %v1317_v44 = vld [vmem:[%s1693_s13 + $0x10] sm:$0xf0] }
  0x19   : > { %783 = vmatpush.bf16.msrb.mxu3 %v1582_v7  ;;  %700 = vmatpush.bf16.msra.mxu0 %v1603_v13  ;;  %v1328_v42 = vor.u32 %v1401_v40, %v1325_v41  ;;  %v1323_v45 = vld [vmem:[%s1693_s13 + $0x8] sm:$0xf]  ;;  %v1403_v46 = vld [vmem:[%s1693_s13 + $0x14] sm:$0xf0]  ;;  %v1320_v47 = vor.u32 %v1400_v43, %v1317_v44  ;;  %v1332_v48 = vld [vmem:[%s1747_s17] sm:$0xf]  ;;  %s463_s13 = scalar_lea.vmem %s1836_s8, %s1370_s25 }
  0x1a   : > { %728 = vmatpush.bf16.msra.mxu2 %v1608_v14  ;;  %v1406_v49 = vld [vmem:[%s1747_s17 + $0xc] sm:$0xf0]  ;;  %v1324_v50 = vor.u32 %v1403_v46, %v1323_v45  ;;  %v1404_v51 = vld [vmem:[%s1747_s17 + $0x4] sm:$0xf]  ;;  %v1334_v52 = vld [vmem:[%s1747_s17 + $0x10] sm:$0xf0] }
  0x1b   : > { %714 = vmatpush.bf16.msra.mxu1 %v1613_v15  ;;  %v1333_v53 = vor.u32 %v1406_v49, %v1332_v48  ;;  %v1337_v54 = vor.u32 %v1404_v51, %v1334_v52  ;;  %v1405_v55 = vld [vmem:[%s1747_s17 + $0xc] sm:$0xf]  ;;  %v1342_v56 = vld [vmem:[%s1747_s17 + $0x18] sm:$0xf0]  ;;  %v1340_v58 = vld [vmem:[%s1747_s17 + $0x8] sm:$0xf] }
  0x1c   : > { %v1345_v57 = vor.u32 %v1405_v55, %v1342_v56  ;;  %v1407_v59 = vld [vmem:[%s1747_s17 + $0x14] sm:$0xf0]  ;;  %v1349_v60 = vld [vmem:[%s453_s20] sm:$0xf]  ;;  %v1410_v61 = vld [vmem:[%s453_s20 + $0xc] sm:$0xf0] }
  0x1d   : > { %784 = vmatpush.bf16.msrb.mxu3 %v1603_v13  ;;  %701 = vmatpush.bf16.msra.mxu0 %v1623_v16  ;;  %v1341_v62 = vor.u32 %v1407_v59, %v1340_v58  ;;  %v1357_v63 = vld [vmem:[%s453_s20 + $0x8] sm:$0xf]  ;;  %v1436_v28 = vld [vmem:[%s1833_s5] ss:$0 sm:$0xff] }
  0x1e   : > { %729 = vmatpush.bf16.msra.mxu2 %v1628_v17 }
  0x1f   : > { %715 = vmatpush.bf16.msra.mxu1 %v1634_v18 }
  0x21   : > { %785 = vmatpush.bf16.msrb.mxu3 %v1623_v16  ;;  %702 = vmatpush.bf16.msra.mxu0 %v1642_v19 }
  0x22   : > { %730 = vmatpush.bf16.msra.mxu2 %v1647_v20 }
  0x23   : > { %716 = vmatpush.bf16.msra.mxu1 %v1653_v21 }
  0x25   : > { %786 = vmatpush.bf16.msrb.mxu3 %v1642_v19  ;;  %703 = vmatpush.bf16.msra.mxu0 %v1661_v22 }
  0x26   : > { %731 = vmatpush.bf16.msra.mxu2 %v1666_v23 }
  0x27   : > { %717 = vmatpush.bf16.msra.mxu1 %v1672_v24 }
  0x29   : > { %787 = vmatpush.bf16.msrb.mxu3 %v1661_v22  ;;  %704 = vmatpush.bf16.msra.mxu0 %v1678_v25 }
  0x2a   : > { %732 = vmatpush.bf16.msra.mxu2 %v1685_v26 }
  0x2b   : > { %718 = vmatpush.bf16.msra.mxu1 %v1699_v29 }
  0x2c   : > { %705 = vmatmul.bf16.vlgmr.msra.gmra.mxu0 %v1199_v35 }
  0x2d   : > { %795 = vmatpush.bf16.msrb.mxu0 %v1544_v3  ;;  %788 = vmatpush.bf16.msrb.mxu3 %v1678_v25 }
  0x2e   : > { %733 = vmatmul.bf16.vlgmr.msra.gmra.mxu2 %v1207_v32  ;;  %719 = vmatmul.bf16.vlgmr.msra.gmra.mxu1 %v1203_v39 }
  0x2f   : > { %809 = vmatpush.bf16.msrb.mxu1 %v1534_v1  ;;  %830 = vmatpush.bf16.msrb.mxu2 %v1539_v2 }
  0x30   : > { %789 = vmatmul.bf16.vlgmr.msrb.gmra.mxu3 %v1316_v38 }
  0x31   : > { %867 = vmatpush.bf16.msra.mxu3 %v1529_v0  ;;  %796 = vmatpush.bf16.msrb.mxu0 %v1565_v6 }
  0x33   : > { %881 = vmatpush.bf16.msra.mxu2 %v1544_v3  ;;  %810 = vmatpush.bf16.msrb.mxu1 %v1556_v5 }
  0x35   : > { %868 = vmatpush.bf16.msra.mxu3 %v1551_v4  ;;  %797 = vmatpush.bf16.msrb.mxu0 %v1593_v9 }
  0x37   : > { %882 = vmatpush.bf16.msra.mxu2 %v1565_v6  ;;  %811 = vmatpush.bf16.msrb.mxu1 %v1587_v8 }
  0x39   : > { %869 = vmatpush.bf16.msra.mxu3 %v1582_v7  ;;  %798 = vmatpush.bf16.msrb.mxu0 %v1613_v15 }
  0x3b   : > { %883 = vmatpush.bf16.msra.mxu2 %v1593_v9  ;;  %812 = vmatpush.bf16.msrb.mxu1 %v1608_v14 }
  0x3d   : > { %870 = vmatpush.bf16.msra.mxu3 %v1603_v13  ;;  %799 = vmatpush.bf16.msrb.mxu0 %v1634_v18 }
  0x3e   : > { %1329 = vmatmul.msk.bf16.vlgmr.msrb.gmra.mxu2 %vm693_vm0, %v1328_v42 }
  0x3f   : > { %884 = vmatpush.bf16.msra.mxu2 %v1613_v15  ;;  %813 = vmatpush.bf16.msrb.mxu1 %v1628_v17 }
  0x41   : > { %871 = vmatpush.bf16.msra.mxu3 %v1623_v16  ;;  %800 = vmatpush.bf16.msrb.mxu0 %v1653_v21 }
  0x43   : > { %885 = vmatpush.bf16.msra.mxu2 %v1634_v18  ;;  %814 = vmatpush.bf16.msrb.mxu1 %v1647_v20 }
  0x45   : > { %872 = vmatpush.bf16.msra.mxu3 %v1642_v19  ;;  %801 = vmatpush.bf16.msrb.mxu0 %v1672_v24 }
  0x47   : > { %886 = vmatpush.bf16.msra.mxu2 %v1653_v21  ;;  %815 = vmatpush.bf16.msrb.mxu1 %v1666_v23 }
  0x49   : > { %873 = vmatpush.bf16.msra.mxu3 %v1661_v22  ;;  %802 = vmatpush.bf16.msrb.mxu0 %v1699_v29 }
  0x4b   : > { %887 = vmatpush.bf16.msra.mxu2 %v1672_v24  ;;  %816 = vmatpush.bf16.msrb.mxu1 %v1685_v26 }
  0x4c   : > { %803 = vmatmul.bf16.vlgmr.msrb.gmra.mxu0 %v1320_v47 }
  0x4d   : > { %895 = vmatpush.bf16.msra.mxu0 %v1534_v1  ;;  %874 = vmatpush.bf16.msra.mxu3 %v1678_v25 }
  0x4e   : > { %817 = vmatmul.bf16.vlgmr.msrb.gmra.mxu1 %v1324_v50 }
  0x4f   : > { %916 = vmatpush.bf16.msra.mxu1 %v1539_v2  ;;  %888 = vmatpush.bf16.msra.mxu2 %v1699_v29 }
  0x50   : > { %875 = vmatmul.bf16.vlgmr.msra.gmra.mxu3 %v1333_v53 }
  0x51   : > { %953 = vmatpush.bf16.msrb.mxu3 %v1529_v0  ;;  %896 = vmatpush.bf16.msra.mxu0 %v1556_v5  ;;  %v1411_v0 = vld [vmem:[%s453_s20 + $0x14] sm:$0xf0] }
  0x52   : > { %889 = vmatmul.bf16.vlgmr.msra.gmra.mxu2 %v1337_v54 }
  0x53   : > { %981 = vmatpush.bf16.msrb.mxu2 %v1534_v1  ;;  %967 = vmatpush.bf16.msrb.mxu1 %v1544_v3  ;;  %v1350_v1 = vor.u32 %v1410_v61, %v1349_v60  ;;  %v1408_v3 = vld [vmem:[%s453_s20 + $0x4] sm:$0xf] }
  0x55   : > { %954 = vmatpush.bf16.msrb.mxu3 %v1551_v4  ;;  %897 = vmatpush.bf16.msra.mxu0 %v1587_v8  ;;  %v1351_v4 = vld [vmem:[%s453_s20 + $0x10] sm:$0xf0] }
  0x57   : > { %982 = vmatpush.bf16.msrb.mxu2 %v1556_v5  ;;  %968 = vmatpush.bf16.msrb.mxu1 %v1565_v6  ;;  %v1358_v5 = vor.u32 %v1411_v0, %v1357_v63  ;;  %v1354_v6 = vor.u32 %v1408_v3, %v1351_v4 }
  0x59   : > { %955 = vmatpush.bf16.msrb.mxu3 %v1582_v7  ;;  %898 = vmatpush.bf16.msra.mxu0 %v1608_v14  ;;  %v1409_v7 = vld [vmem:[%s453_s20 + $0xc] sm:$0xf] }
  0x5b   : > { %983 = vmatpush.bf16.msrb.mxu2 %v1587_v8  ;;  %969 = vmatpush.bf16.msrb.mxu1 %v1593_v9  ;;  %v1359_v8 = vld [vmem:[%s453_s20 + $0x18] sm:$0xf0] }
  0x5c   : > { %v1362_v9 = vor.u32 %v1409_v7, %v1359_v8 }
  0x5d   : > { %956 = vmatpush.bf16.msrb.mxu3 %v1603_v13  ;;  %899 = vmatpush.bf16.msra.mxu0 %v1628_v17 }
  0x5e   : > { %1346 = vmatmul.msk.bf16.vlgmr.msra.gmra.mxu1 %vm693_vm0, %v1345_v57 }
  0x5f   : > { %984 = vmatpush.bf16.msrb.mxu2 %v1608_v14  ;;  %970 = vmatpush.bf16.msrb.mxu1 %v1613_v15 }
  0x61   : > { %957 = vmatpush.bf16.msrb.mxu3 %v1623_v16  ;;  %900 = vmatpush.bf16.msra.mxu0 %v1647_v20 }
  0x63   : > { %985 = vmatpush.bf16.msrb.mxu2 %v1628_v17  ;;  %971 = vmatpush.bf16.msrb.mxu1 %v1634_v18 }
  0x65   : > { %958 = vmatpush.bf16.msrb.mxu3 %v1642_v19  ;;  %901 = vmatpush.bf16.msra.mxu0 %v1666_v23 }
  0x67   : > { %986 = vmatpush.bf16.msrb.mxu2 %v1647_v20  ;;  %972 = vmatpush.bf16.msrb.mxu1 %v1653_v21 }
  0x69   : > { %959 = vmatpush.bf16.msrb.mxu3 %v1661_v22  ;;  %902 = vmatpush.bf16.msra.mxu0 %v1685_v26 }
  0x6b   : > { %987 = vmatpush.bf16.msrb.mxu2 %v1666_v23  ;;  %973 = vmatpush.bf16.msrb.mxu1 %v1672_v24 }
  0x6c   : > { %903 = vmatmul.bf16.vlgmr.msra.gmra.mxu0 %v1341_v62 }
  0x6d   : > { %1002 = vmatpush.bf16.msrb.mxu0 %v1539_v2  ;;  %960 = vmatpush.bf16.msrb.mxu3 %v1678_v25 }
  0x6f   : > { %988 = vmatpush.bf16.msrb.mxu2 %v1685_v26  ;;  %974 = vmatpush.bf16.msrb.mxu1 %v1699_v29 }
  0x70   : > { %961 = vmatmul.bf16.vlgmr.msrb.gmra.mxu3 %v1350_v1 }
  0x72   : > { %989 = vmatmul.bf16.vlgmr.msrb.gmra.mxu2 %v1358_v5  ;;  %975 = vmatmul.bf16.vlgmr.msrb.gmra.mxu1 %v1354_v6 }
  0x7c   : > { %1363 = vmatmul.msk.bf16.vlgmr.msrb.gmra.mxu0 %vm693_vm0, %v1362_v9 }
  0x96   : > { %v748_v2 = vpop.f32.mrf.mxu3 }
  0x9e   : > { %v750_v12 = vpop.f32.mrf.mxu3 }
  0xa9   : > { %v706_v13 = vpop.f32.mrf.mxu0 }
  0xaa   : > { %v707_v31 = vadd.f32 %v1436_v28, %v706_v13 }
  0xab   : > { %v720_v10 = vpop.f32.mrf.mxu1 }
  0xac   : > { %v721_v36 = vadd.f32 %v720_v10, %v707_v31 }
  0xb1   : > { %v734_v11 = vpop.f32.mrf.mxu2  ;;  %v708_v18 = vpop.f32.mrf.mxu0 }
  0xb2   : > { %v709_v41 = vadd.f32 %v1436_v28, %v708_v18  ;;  %v735_v42 = vadd.f32 %v734_v11, %v721_v36  ;;  %v1437_v11 = vld [vmem:[%s1834_s6] ss:$0 sm:$0xff] }
  0xb3   : > { %v722_v14 = vpop.f32.mrf.mxu1  ;;  %v790_v16 = vpop.f32.mrf.mxu3 }
  0xb4   : > { %v791_v29 = vadd.f32 %v1436_v28, %v790_v16  ;;  %v723_v51 = vadd.f32 %v722_v14, %v709_v41  ;;  %v749_v52 = vadd.f32 %v748_v2, %v735_v42  ;;  %v1438_v16 = vld [vmem:[%s1835_s7] ss:$0 sm:$0xff] }
  0xb6   : > { %v753_v61 = vmax.f32 %v749_v52, 0.0 }
  0xb9   : > { %v736_v15 = vpop.f32.mrf.mxu2 }
  0xba   : > { %v737_v60 = vadd.f32 %v736_v15, %v723_v51 }
  0xbb   : > { %v792_v20 = vpop.f32.mrf.mxu3 }
  0xbc   : > { %v793_v39 = vadd.f32 %v1436_v28, %v792_v20  ;;  %v751_v7 = vadd.f32 %v750_v12, %v737_v60 }
  0xbe   : > { %v754_v18 = vmax.f32 %v751_v7, 0.0 }
  0xc1   : > { %v832_v19 = vpop.f32.mrf.mxu2 }
  0xc9   : > { %v804_v22 = vpop.f32.mrf.mxu0  ;;  %v834_v23 = vpop.f32.mrf.mxu2 }
  0xca   : > { %v805_v34 = vadd.f32 %v804_v22, %v791_v29 }
  0xcb   : > { %v818_v17 = vpop.f32.mrf.mxu1 }
  0xcc   : > { %v819_v38 = vadd.f32 %v818_v17, %v805_v34 }
  0xce   : > { %v833_v47 = vadd.f32 %v832_v19, %v819_v38 }
  0xd0   : > { %v837_v56 = vmax.f32 %v833_v47, 0.0 }
  0xd1   : > { %v806_v26 = vpop.f32.mrf.mxu0 }
  0xd2   : > { %v807_v48 = vadd.f32 %v806_v26, %v793_v39  ;;  %v839_v3 = vmax.f32 %v753_v61, %v837_v56 }
  0xd3   : > { %v820_v21 = vpop.f32.mrf.mxu1  ;;  %v876_v25 = vpop.f32.mrf.mxu3 }
  0xd4   : > { %v877_v35 = vadd.f32 %v1436_v28, %v876_v25  ;;  %v821_v57 = vadd.f32 %v820_v21, %v807_v48 }
  0xd5   : > { %v890_v27 = vpop.f32.mrf.mxu2 }
  0xd6   : > { %v891_v40 = vadd.f32 %v890_v27, %v877_v35  ;;  %v835_v4 = vadd.f32 %v834_v23, %v821_v57 }
  0xd8   : > { %v838_v14 = vmax.f32 %v835_v4, 0.0 }
  0xda   : > { %v840_v22 = vmax.f32 %v754_v18, %v838_v14 }
  0xdb   : > { %v918_v24 = vpop.f32.mrf.mxu1  ;;  %v878_v32 = vpop.f32.mrf.mxu3 }
  0xdc   : > { %v879_v49 = vadd.f32 %v1436_v28, %v878_v32 }
  0xdd   : > { %v892_v37 = vpop.f32.mrf.mxu2 }
  0xde   : > { %v893_v58 = vadd.f32 %v892_v37, %v879_v49 }
  0xe3   : > { %v920_v30 = vpop.f32.mrf.mxu1 }
  0xe9   : > { %v904_v33 = vpop.f32.mrf.mxu0 }
  0xea   : > { %v905_v43 = vadd.f32 %v904_v33, %v891_v40 }
  0xec   : > { %v919_v53 = vadd.f32 %v918_v24, %v905_v43 }
  0xee   : > { %v923_v62 = vmax.f32 %v919_v53, 0.0 }
  0xef   : > { %v976_v44 = vpop.f32.mrf.mxu1 }
  0xf0   : > { %v925_v2 = vmax.f32 %v839_v3, %v923_v62 }
  0xf1   : > { %v906_v46 = vpop.f32.mrf.mxu0 }
  0xf2   : > { %v907_v63 = vadd.f32 %v906_v46, %v893_v58 }
  0xf3   : > { %v962_v45 = vpop.f32.mrf.mxu3 }
  0xf4   : > { %v963_v50 = vadd.f32 %v1436_v28, %v962_v45  ;;  %v921_v9 = vadd.f32 %v920_v30, %v907_v63 }
  0xf5   : > { %v990_v55 = vpop.f32.mrf.mxu2 }
  0xf6   : > { %v977_v54 = vadd.f32 %v976_v44, %v963_v50  ;;  %v924_v19 = vmax.f32 %v921_v9, 0.0 }
  0xf7   : > { %v978_v8 = vpop.f32.mrf.mxu1 }
  0xf8   : > { %v991_v59 = vadd.f32 %v990_v55, %v977_v54  ;;  %v926_v25 = vmax.f32 %v840_v22, %v924_v19 }
  0xf9   : > { %v1004_v1 = vpop.f32.mrf.mxu0 }
  0xfa   : > { %v1005_v6 = vadd.f32 %v1004_v1, %v991_v59 }
  0xfb   : > { %v964_v0 = vpop.f32.mrf.mxu3 }
  0xfc   : > { %v965_v5 = vadd.f32 %v1436_v28, %v964_v0  ;;  %v1009_v10 = vmax.f32 %v1005_v6, 0.0 }
  0xfd   : > { %v992_v17 = vpop.f32.mrf.mxu2 }
  0xfe   : > { %v979_v13 = vadd.f32 %v978_v8, %v965_v5  ;;  %v1011_v15 = vmax.f32 %v925_v2, %v1009_v10 }
 0x100   : > { %v1017_v12 = vmul.f32 %v1437_v11, %v1011_v15  ;;  %v993_v20 = vadd.f32 %v992_v17, %v979_v13 }
 0x101   : > { %v1006_v21 = vpop.f32.mrf.mxu0 }
 0x102   : > { %v1023_v23 = vadd.f32 %v1438_v16, %v1017_v12  ;;  %v1007_v24 = vadd.f32 %v1006_v21, %v993_v20 }
 0x104   : > { %1026 = vst.msk [vmem:[%s463_s13] sm:$0xff] %vm1025_vm1, %v1023_v23  ;;  %v1010_v26 = vmax.f32 %v1007_v24, 0.0 }
 0x106   : > { %v1012_v27 = vmax.f32 %v926_v25, %v1010_v26 }
 0x108   : > { %v1018_v28 = vmul.f32 %v1437_v11, %v1012_v27 }
 0x10a   : > { %v1024_v29 = vadd.f32 %v1438_v16, %v1018_v28 }
 0x10c   : > { %1027 = vst.msk [vmem:[%s463_s13 + $0x8] sm:$0xff] %vm1025_vm1, %v1024_v29 }
 0x10d PF: > { %s18_s29 = sadd.s32 1, %s1461_s29   ;;  %s1837_s27 = smov %s1457_s28 }
 0x10e   : > { %p15_p5 = scmp.ge.s32.totalorder %s18_s29, 4   ;;  %s1838_s28 = smov %s1840_s30 }
 0x110   :  { %17 = sbr.rel (!%p15_p5) target bundleno = 2 (0x2), region = 91 }

</bundles_post_ra>
